<compile_context>
chip_gen: v7x
topology: tpu7x:2x2x1
jax: 0.10.0
libtpu: 0.0.40
codegen_flags: <defaults>
</compile_context>

<pallas_src>
import jax
import jax.numpy as jnp
from jax.experimental import pallas as pl
from jax.experimental.pallas import tpu as pltpu


_LANES = 128                          # TPU lane width: lane-dense slab last dim.
_MAX_COLS = 2048                      # cap on lane-dense slab width.
_TARGET_CHUNK_BYTES = 8 * 1024 * 1024  # per-DMA chunk size target (HBM->HBM).
_MAX_CHUNKS = 8                       # cap on in-flight DMA descriptors.


def _lane_dense_factorization(total: int):
    """Factor `total` as rows * cols with cols a multiple of 128 (<= 2048)."""
    if total == 0 or total % _LANES != 0:
        return None
    cols = _LANES
    while cols * 2 <= _MAX_COLS and total % (cols * 2) == 0:
        cols *= 2
    return total // cols, cols


def _chunk_layout(rows: int, bytes_per_row: int):
    """Static (start, size) chunks along axis 0, each ~_TARGET_CHUNK_BYTES."""
    total_bytes = rows * bytes_per_row
    n = max(1, -(-total_bytes // _TARGET_CHUNK_BYTES))   # ceil-div
    n = min(n, _MAX_CHUNKS, rows)
    base, rem = divmod(rows, n)
    chunks, start = [], 0
    for c in range(n):
        size = base + (1 if c < rem else 0)
        chunks.append((start, size))
        start += size
    return tuple(chunks)


def _make_dma_copy_kernel(chunks):
    """HBM->HBM copy: issue all chunk DMAs, then wait on them (static unroll)."""
    def kernel(x_hbm, o_hbm, sem):
        copies = []
        for c, (start, size) in enumerate(chunks):
            cp = pltpu.make_async_copy(
                x_hbm.at[pl.ds(start, size)],
                o_hbm.at[pl.ds(start, size)],
                sem.at[c],
            )
            cp.start()
            copies.append(cp)
        for cp in copies:
            cp.wait()
    return kernel


def _pallas_dma_copy(y: jax.Array) -> jax.Array:
    """Copy the (already squeezed) array with chunked HBM->HBM DMAs."""
    out_shape = y.shape
    fact = _lane_dense_factorization(y.size)
    # Lane-dense 2-D slab when possible; otherwise a contiguous 1-D run
    # (DMA engines handle either -- no (8,128) tiling constraint on HBM refs).
    slab = y.reshape(fact) if fact is not None else y.reshape(-1)
    rows = slab.shape[0]
    bytes_per_row = (slab.size // rows) * slab.dtype.itemsize
    chunks = _chunk_layout(rows, bytes_per_row)

    out = pl.pallas_call(
        _make_dma_copy_kernel(chunks),
        out_shape=jax.ShapeDtypeStruct(slab.shape, slab.dtype),
        in_specs=[pl.BlockSpec(memory_space=pl.ANY)],
        out_specs=pl.BlockSpec(memory_space=pl.ANY),
        scratch_shapes=[pltpu.SemaphoreType.DMA((len(chunks),))],
        cost_estimate=pl.CostEstimate(
            flops=0,
            transcendentals=0,
            bytes_accessed=2 * slab.size * slab.dtype.itemsize,
        ),
    )(slab)
    return out.reshape(out_shape)


def pallas_squeeze(x: jax.Array, dim: int = -1, *, force_pallas: bool = False) -> jax.Array:
    """Pallas/JAX equivalent of torch.Tensor.squeeze(dim=dim)."""
    ndim = x.ndim
    axis = dim if dim >= 0 else dim + ndim
    if not (0 <= axis < ndim):
        raise ValueError(f"dim {dim} out of range for ndim {ndim}")

    # torch.squeeze(dim) is a no-op when that dim is not size 1.
    if x.shape[axis] != 1:
        return x

    # Default path for ALL sizes: metadata-only squeeze (no kernel, no HBM traffic).
    y = jax.lax.squeeze(x, (axis,))
    if not force_pallas or y.size == 0:
        return y

    # Fusion-stub path: explicit chunked HBM->HBM DMA copy kernel.
    return _pallas_dma_copy(y)


if __name__ == "__main__":
    key = jax.random.PRNGKey(0)

    # (B, C, H, W, 1) with a trailing size-1 dim -- the module's dim=-1 case.
    x = jax.random.normal(key, (2, 4, 16, 16, 1), dtype=jnp.float32)
    ref = jnp.squeeze(x, axis=-1)

    # Default path: metadata-only squeeze (fastest; no kernel launch).
    y = jax.block_until_ready(pallas_squeeze(x, dim=-1))
    assert y.shape == (2, 4, 16, 16), y.shape
    assert y.dtype == x.dtype
    assert jnp.array_equal(y, ref)

    # force_pallas path: lane-dense slab through the HBM->HBM DMA copy kernel.
    yk = jax.block_until_ready(pallas_squeeze(x, dim=-1, force_pallas=True))
    assert yk.shape == (2, 4, 16, 16), yk.shape
    assert jnp.array_equal(yk, ref)

    # force_pallas on a non-128-multiple size: contiguous 1-D DMA fallback
    # (no silent lax.squeeze fallback anymore -- a kernel always launches).
    x_odd = jax.random.normal(jax.random.PRNGKey(1), (3, 5, 7, 1), dtype=jnp.float32)
    y_odd = jax.block_until_ready(pallas_squeeze(x_odd, dim=-1, force_pallas=True))
    assert y_odd.shape == (3, 5, 7), y_odd.shape
    assert jnp.array_equal(y_odd, jnp.squeeze(x_odd, axis=-1))

    # No-op path (dim not of size 1) matches torch semantics.
    z = jax.block_until_ready(pallas_squeeze(y, dim=-1))
    assert z.shape == y.shape and jnp.array_equal(z, y)

    print("KERNEL_OK")
</pallas_src>

<mosaic_0001>
module attributes {stable_mosaic.version = 11 : i64} {
  func.func @kernel(%arg0: memref<1x2048xf32, #tpu.memory_space<any>>, %arg1: memref<1x2048xf32, #tpu.memory_space<any>>, %arg2: memref<1x!tpu.dma_semaphore, #tpu.memory_space<semaphore_mem>>) attributes {dimension_semantics = [], scalar_prefetch = 0 : i64, scratch_operands = 1 : i64, tpu.core_type = #tpu.core_type<tc>} {
    %c0_i32 = arith.constant 0 : i32
    %c0_i32_0 = arith.constant 0 : i32
    %c0_i32_1 = arith.constant 0 : i32
    %0 = tpu.memref_slice %arg0[%c0_i32_0, %c0_i32_1] : memref<1x2048xf32, #tpu.memory_space<any>> -> memref<1x2048xf32, #tpu.memory_space<any>>
    %c0_i32_2 = arith.constant 0 : i32
    %c0_i32_3 = arith.constant 0 : i32
    %1 = tpu.memref_slice %arg1[%c0_i32_2, %c0_i32_3] : memref<1x2048xf32, #tpu.memory_space<any>> -> memref<1x2048xf32, #tpu.memory_space<any>>
    %2 = tpu.memref_slice %arg2[%c0_i32] : memref<1x!tpu.dma_semaphore, #tpu.memory_space<semaphore_mem>> -> memref<1x!tpu.dma_semaphore, #tpu.memory_space<semaphore_mem>>
    %3 = tpu.memref_squeeze %2 : memref<1x!tpu.dma_semaphore, #tpu.memory_space<semaphore_mem>> -> memref<!tpu.dma_semaphore, #tpu.memory_space<semaphore_mem>>
    tpu.enqueue_dma source(%0 : memref<1x2048xf32, #tpu.memory_space<any>>) target(%1 : memref<1x2048xf32, #tpu.memory_space<any>>) target_semaphore(%3 : memref<!tpu.dma_semaphore, #tpu.memory_space<semaphore_mem>>)
    %c0_i32_4 = arith.constant 0 : i32
    %c0_i32_5 = arith.constant 0 : i32
    %c0_i32_6 = arith.constant 0 : i32
    %4 = tpu.memref_slice %arg0[%c0_i32_5, %c0_i32_6] : memref<1x2048xf32, #tpu.memory_space<any>> -> memref<1x2048xf32, #tpu.memory_space<any>>
    %c0_i32_7 = arith.constant 0 : i32
    %c0_i32_8 = arith.constant 0 : i32
    %5 = tpu.memref_slice %arg1[%c0_i32_7, %c0_i32_8] : memref<1x2048xf32, #tpu.memory_space<any>> -> memref<1x2048xf32, #tpu.memory_space<any>>
    %6 = tpu.memref_slice %arg2[%c0_i32_4] : memref<1x!tpu.dma_semaphore, #tpu.memory_space<semaphore_mem>> -> memref<1x!tpu.dma_semaphore, #tpu.memory_space<semaphore_mem>>
    %7 = tpu.memref_squeeze %6 : memref<1x!tpu.dma_semaphore, #tpu.memory_space<semaphore_mem>> -> memref<!tpu.dma_semaphore, #tpu.memory_space<semaphore_mem>>
    tpu.wait_dma2 semaphore(%7 : memref<!tpu.dma_semaphore, #tpu.memory_space<semaphore_mem>>) src(%4 : memref<1x2048xf32, #tpu.memory_space<any>>) dst(%5 : memref<1x2048xf32, #tpu.memory_space<any>>)
    return
  }
}

</mosaic_0001>

<bundles_post_ra>
// kernel: tpu_custom_call.1
= control target key start
LH: loop header
LB: loop body
LE: loop exit
PB: predicated region body
PF: predicated region fallthrough
CT: control target
= control target key end

     0   :  { %s34_s6 = smov [#allocation2]   ;;  %s35_s7 = smov [#allocation3]   ;;  %s53_s0 = inlined_call_operand.hbm [shape: f32[1,2048], index: 0, kind: input, shape index: {}]   ;;  %s54_s1 = inlined_call_operand.hbm [shape: f32[1,2048], index: 1, kind: output, shape index: {}]  }
   0x1   :  { %s36_s8 = smov 0  }
   0x2   :  { %18 = dma.general %s53_s0, 256, %s54_s1, %s34_s6, %s35_s7, [#allocation4], %s36_s8, 0  }
   0x3   :  { %32 = dma.done.wait [#allocation2], 256 }
   0x4   :  { %33 = vsyncadd [#allocation2], 4294967040 }
   0x5   :  { %22 = vsyncmov [#allocation2] }
   0x8   :  { %s23_s13 = vpop.sfrf %22 }
   0x9   :  { %p28_p0 = scmp.ne.s32.totalorder %s23_s13, 0 }
   0xb   :  { %27 = shalt.err (%p28_p0)  }

</bundles_post_ra>
